<compile_context>
chip_gen: v6e
topology: v6e:2x2x1
jax: 0.10.0
libtpu: 0.0.40
codegen_flags: <defaults>
</compile_context>

<pallas_src>
import functools

import jax
import jax.numpy as jnp
from jax import lax
from jax.experimental import pallas as pl
from jax.experimental.pallas import tpu as pltpu

TEMPERATURE = 0.07
BASE_TEMPERATURE = 0.07  # declared by the PyTorch module but unused in forward


def _round_up(x, m):
    return ((x + m - 1) // m) * m


def _supcon_kernel(fa_ref, fc_ref, la_ref, lc_ref, out_ref,
                   tot_acc, pos_acc, num_acc,
                   *, pad_cols, tb):
    i = pl.program_id(0)          # anchor (output-lane) block
    j = pl.program_id(1)          # contrast (reduction) block
    nj = pl.num_programs(1)

    @pl.when(j == 0)
    def _init():
        tot_acc[...] = jnp.zeros_like(tot_acc)
        pos_acc[...] = jnp.zeros_like(pos_acc)
        num_acc[...] = jnp.zeros_like(num_acc)

    xa = fa_ref[...]              # (tb, d_pad), pre-normalized & 1/sqrt(T)-scaled
    xc = fc_ref[...]              # (tb, d_pad)

    # s[c, a] = <xc_c, xa_a> = cos(c, a) / temperature  -> anchors are lane-dense.
    s = lax.dot_general(
        xc, xa,
        dimension_numbers=(((1,), (1,)), ((), ())),
        preferred_element_type=jnp.float32,
        precision=lax.Precision.HIGHEST,
    )
    e = jnp.exp(s)                                            # (tb, tb) f32
    # Label match; padded labels are -1 and never match a real anchor.
    eq = (lc_ref[...] == la_ref[...]).astype(jnp.float32)     # (tb,1)==(1,tb) -> (tb,tb)

    @pl.when(i != j)
    def _offdiag_tile():
        tot_acc[...] += jnp.sum(e, axis=0, keepdims=True)
        pos_acc[...] += jnp.sum(eq * e, axis=0, keepdims=True)
        num_acc[...] += jnp.sum(eq, axis=0, keepdims=True)

    @pl.when(i == j)
    def _diag_tile():
        # Exclude the self-similarity BEFORE reducing so exp(1/T) ~ 1.6e6 never
        # enters the accumulators (avoids catastrophic cancellation).
        rr = lax.broadcasted_iota(jnp.int32, (tb, tb), 0)
        cc = lax.broadcasted_iota(jnp.int32, (tb, tb), 1)
        off = (rr != cc).astype(jnp.float32)
        eo = e * off
        tot_acc[...] += jnp.sum(eo, axis=0, keepdims=True)
        pos_acc[...] += jnp.sum(eq * eo, axis=0, keepdims=True)
        num_acc[...] += jnp.sum(eq * off, axis=0, keepdims=True)

    @pl.when(j == nj - 1)
    def _finalize():
        # Each padded (all-zero) contrast row contributed exactly exp(0) == 1.0
        # to every anchor's total; remove that constant here.
        tot = tot_acc[...] - pad_cols
        num = num_acc[...]
        num = jnp.where(num != 0.0, num, jnp.ones_like(num))
        out_ref[...] = pos_acc[...] / (tot * num)


def supcon_loss(features, labels, temperature=TEMPERATURE,
                block_b=256, vmem_limit_bytes=None):
    """SupConLoss forward (supervised-labels path). features: [B, D]; labels: [B]."""
    # TODO(synk): the labels=None (eye mask) and explicit-`mask` branches of the
    # PyTorch forward are not implemented; only the labels path is translated.
    B, D = features.shape
    if B <= block_b:
        tb = _round_up(B, 8)
    else:
        assert block_b % 128 == 0, "block_b must be a multiple of 128 when tiling"
        tb = block_b
    b_pad = _round_up(B, tb)
    d_pad = _round_up(D, 128)
    n_blk = b_pad // tb
    pad_cols = float(b_pad - B)

    # Normalize once here (instead of per tile inside the kernel) and fold
    # sqrt(1/temperature) into the scale so the MXU directly produces sim / T.
    x = features.astype(jnp.float32)
    scale = lax.rsqrt(jnp.sum(x * x, axis=1, keepdims=True))
    xn = x * (scale * jnp.sqrt(jnp.float32(1.0 / temperature)))

    # Padded rows stay all-zero: exp(0) == 1 contributions are removed by a
    # constant subtraction in the kernel's finalize step.
    feat = jnp.zeros((b_pad, d_pad), jnp.float32).at[:B, :D].set(xn)

    lab = labels.reshape(-1).astype(jnp.int32)
    lab_pad = jnp.full((b_pad,), -1, jnp.int32).at[:B].set(lab)
    lab_anchor = lab_pad.reshape(1, b_pad)      # lane-dense anchor labels
    lab_contrast = lab_pad.reshape(b_pad, 1)    # sublane-oriented contrast labels

    kernel = functools.partial(_supcon_kernel, pad_cols=pad_cols, tb=tb)

    grid_spec = pltpu.PrefetchScalarGridSpec(
        num_scalar_prefetch=0,
        grid=(n_blk, n_blk),
        in_specs=[
            pl.BlockSpec((tb, d_pad), lambda i, j: (i, 0)),   # anchor features
            pl.BlockSpec((tb, d_pad), lambda i, j: (j, 0)),   # contrast features
            pl.BlockSpec((1, tb), lambda i, j: (0, i)),       # anchor labels (lanes)
            pl.BlockSpec((tb, 1), lambda i, j: (j, 0)),       # contrast labels
        ],
        out_specs=pl.BlockSpec((1, tb), lambda i, j: (0, i)),
        scratch_shapes=[pltpu.VMEM((1, tb), jnp.float32)] * 3,
    )

    exp_prob = pl.pallas_call(
        kernel,
        out_shape=jax.ShapeDtypeStruct((1, b_pad), jnp.float32),
        grid_spec=grid_spec,
        compiler_params=pltpu.CompilerParams(
            dimension_semantics=("parallel", "arbitrary"),
            vmem_limit_bytes=vmem_limit_bytes,
        ),
    )(feat, feat, lab_anchor, lab_contrast)

    # Tiny scalar epilogue (mean over real anchors, then -log) in plain JAX.
    return -jnp.log(jnp.mean(exp_prob[0, :B]))


def supcon_loss_ref(features, labels, temperature=TEMPERATURE):
    """Pure-JAX check, mathematically identical to the PyTorch forward.

    PyTorch computes sum(exp_sim, 1) - diag and (mask - eye); here the diagonal
    is excluded from the sums directly — the same quantity, but without the f32
    cancellation of subtracting exp(1/T) ~ 1.6e6 from a nearly-equal sum.
    """
    x = features.astype(jnp.float32)
    B = x.shape[0]
    xn = x / jnp.linalg.norm(x, axis=1, keepdims=True)
    sim = jnp.exp(jnp.matmul(xn, xn.T, precision=lax.Precision.HIGHEST) / temperature)
    off = 1.0 - jnp.eye(B, dtype=jnp.float32)
    tot_sum = jnp.sum(sim * off, axis=1)
    lab = labels.reshape(-1, 1)
    mask = (lab == lab.T).astype(jnp.float32) * off
    pos_num = jnp.sum(mask, axis=1)
    pos_sum = jnp.sum(mask * sim, axis=1)
    pos_num = jnp.where(pos_num != 0, pos_num, jnp.ones_like(pos_num))
    return -jnp.log(jnp.mean(pos_sum / tot_sum / pos_num))


if __name__ == "__main__":
    key = jax.random.PRNGKey(0)
    kf, kl = jax.random.split(key)

    # Small shapes implied by the module: batch=8, hidden=32.
    B, D = 8, 32
    features = jax.random.normal(kf, (B, D), dtype=jnp.float32)
    labels = jax.random.randint(kl, (B,), 0, 3, dtype=jnp.int32)
    loss = jax.block_until_ready(supcon_loss(features, labels))
    ref = jax.block_until_ready(supcon_loss_ref(features, labels))
    assert jnp.isfinite(loss), "loss is not finite"
    assert jnp.allclose(loss, ref, rtol=1e-4, atol=1e-4), (loss, ref)

    # Larger, unaligned shape to exercise the 2-D grid, padding, off-diagonal
    # and diagonal tiles, and the lane-dense output path.
    kf2, kl2 = jax.random.split(jax.random.PRNGKey(1))
    B2, D2 = 300, 40
    features2 = jax.random.normal(kf2, (B2, D2), dtype=jnp.float32)
    labels2 = jax.random.randint(kl2, (B2,), 0, 7, dtype=jnp.int32)
    loss2 = jax.block_until_ready(supcon_loss(features2, labels2))
    ref2 = jax.block_until_ready(supcon_loss_ref(features2, labels2))
    assert jnp.isfinite(loss2), "loss2 is not finite"
    assert jnp.allclose(loss2, ref2, rtol=1e-4, atol=1e-4), (loss2, ref2)

    print("KERNEL_OK")
</pallas_src>

<mosaic_0001>
module attributes {stable_mosaic.version = 11 : i64} {
  func.func @_supcon_kernel(%arg0: i32, %arg1: i32, %arg2: memref<8x128xf32, #tpu.memory_space<vmem>>, %arg3: memref<8x128xf32, #tpu.memory_space<vmem>>, %arg4: memref<1x8xi32, #tpu.memory_space<vmem>>, %arg5: memref<8x1xi32, #tpu.memory_space<vmem>>, %arg6: memref<1x8xf32, #tpu.memory_space<vmem>>, %arg7: memref<1x8xf32, #tpu.memory_space<vmem>>, %arg8: memref<1x8xf32, #tpu.memory_space<vmem>>, %arg9: memref<1x8xf32, #tpu.memory_space<vmem>>) attributes {dimension_semantics = [#tpu.dimension_semantics<parallel>, #tpu.dimension_semantics<arbitrary>], iteration_bounds = array<i64: 1, 1>, scalar_prefetch = 0 : i64, scratch_operands = 3 : i64, tpu.core_type = #tpu.core_type<tc>, window_params = [{transform_indices = @transform_0, window_bounds = array<i64: 8, 128>}, {transform_indices = @transform_1, window_bounds = array<i64: 8, 128>}, {transform_indices = @transform_2, window_bounds = array<i64: 1, 8>}, {transform_indices = @transform_3, window_bounds = array<i64: 8, 1>}, {transform_indices = @transform_4, window_bounds = array<i64: 1, 8>}]} {
    %c0_i32 = arith.constant 0 : i32
    %0 = arith.cmpi eq, %arg1, %c0_i32 : i32
    %1 = arith.extui %0 : i1 to i32
    %c0_i32_0 = arith.constant 0 : i32
    %2 = arith.cmpi ne, %1, %c0_i32_0 : i32
    scf.if %2 {
      %cst_12 = arith.constant 0.000000e+00 : f32
      %23 = vector.broadcast %cst_12 : f32 to vector<1x8xf32>
      %c0_13 = arith.constant 0 : index
      %c0_14 = arith.constant 0 : index
      %24 = vector.load %arg7[%c0_13, %c0_14] : memref<1x8xf32, #tpu.memory_space<vmem>>, vector<1x8xf32>
      tpu.vector_store %arg7[%c0_13, %c0_14], %23 {strides = array<i32>} : memref<1x8xf32, #tpu.memory_space<vmem>>, vector<1x8xf32>,
      %cst_15 = arith.constant 0.000000e+00 : f32
      %25 = vector.broadcast %cst_15 : f32 to vector<1x8xf32>
      %c0_16 = arith.constant 0 : index
      %c0_17 = arith.constant 0 : index
      %26 = vector.load %arg8[%c0_16, %c0_17] : memref<1x8xf32, #tpu.memory_space<vmem>>, vector<1x8xf32>
      tpu.vector_store %arg8[%c0_16, %c0_17], %25 {strides = array<i32>} : memref<1x8xf32, #tpu.memory_space<vmem>>, vector<1x8xf32>,
      %cst_18 = arith.constant 0.000000e+00 : f32
      %27 = vector.broadcast %cst_18 : f32 to vector<1x8xf32>
      %c0_19 = arith.constant 0 : index
      %c0_20 = arith.constant 0 : index
      %28 = vector.load %arg9[%c0_19, %c0_20] : memref<1x8xf32, #tpu.memory_space<vmem>>, vector<1x8xf32>
      tpu.vector_store %arg9[%c0_19, %c0_20], %27 {strides = array<i32>} : memref<1x8xf32, #tpu.memory_space<vmem>>, vector<1x8xf32>,
    } else {
    }
    %c0 = arith.constant 0 : index
    %c0_1 = arith.constant 0 : index
    %3 = vector.load %arg2[%c0, %c0_1] : memref<8x128xf32, #tpu.memory_space<vmem>>, vector<8x128xf32>
    %c0_2 = arith.constant 0 : index
    %c0_3 = arith.constant 0 : index
    %4 = vector.load %arg3[%c0_2, %c0_3] : memref<8x128xf32, #tpu.memory_space<vmem>>, vector<8x128xf32>
    %cst = arith.constant dense<0.000000e+00> : vector<8x8xf32>
    %5 = tpu.matmul %4, %3, %cst {dimension_numbers = #tpu.dot_dimension_numbers<[1], [1], [0], [0], [0, 0, 1, 0], [], []>, precision = #tpu.contract_precision<fp32>} : vector<8x128xf32>, vector<8x128xf32>, vector<8x8xf32> -> vector<8x8xf32>
    %6 = math.exp %5 : vector<8x8xf32>
    %c0_4 = arith.constant 0 : index
    %c0_5 = arith.constant 0 : index
    %7 = vector.load %arg5[%c0_4, %c0_5] : memref<8x1xi32, #tpu.memory_space<vmem>>, vector<8x1xi32>
    %c0_6 = arith.constant 0 : index
    %c0_7 = arith.constant 0 : index
    %8 = vector.load %arg4[%c0_6, %c0_7] : memref<1x8xi32, #tpu.memory_space<vmem>>, vector<1x8xi32>
    %9 = vector.broadcast %7 : vector<8x1xi32> to vector<8x8xi32>
    %10 = vector.broadcast %8 : vector<1x8xi32> to vector<8x8xi32>
    %11 = arith.cmpi eq, %9, %10 : vector<8x8xi32>
    %12 = arith.extui %11 : vector<8x8xi1> to vector<8x8xi32>
    %13 = arith.sitofp %12 : vector<8x8xi32> to vector<8x8xf32>
    %14 = arith.cmpi ne, %arg0, %arg1 : i32
    %15 = arith.extui %14 : i1 to i32
    %c0_i32_8 = arith.constant 0 : i32
    %16 = arith.cmpi ne, %15, %c0_i32_8 : i32
    scf.if %16 {
      %c0_12 = arith.constant 0 : index
      %c0_13 = arith.constant 0 : index
      %23 = vector.load %arg7[%c0_12, %c0_13] : memref<1x8xf32, #tpu.memory_space<vmem>>, vector<1x8xf32>
      %cst_14 = arith.constant dense<0.000000e+00> : vector<8xf32>
      %24 = vector.multi_reduction <add>, %6, %cst_14 [0] : vector<8x8xf32> to vector<8xf32>
      %25 = vector.shape_cast %24 : vector<8xf32> to vector<1x8xf32>
      %26 = arith.addf %23, %25 : vector<1x8xf32>
      %c0_15 = arith.constant 0 : index
      %c0_16 = arith.constant 0 : index
      %27 = vector.load %arg7[%c0_15, %c0_16] : memref<1x8xf32, #tpu.memory_space<vmem>>, vector<1x8xf32>
      tpu.vector_store %arg7[%c0_15, %c0_16], %26 {strides = array<i32>} : memref<1x8xf32, #tpu.memory_space<vmem>>, vector<1x8xf32>,
      %c0_17 = arith.constant 0 : index
      %c0_18 = arith.constant 0 : index
      %28 = vector.load %arg8[%c0_17, %c0_18] : memref<1x8xf32, #tpu.memory_space<vmem>>, vector<1x8xf32>
      %29 = arith.mulf %13, %6 : vector<8x8xf32>
      %cst_19 = arith.constant dense<0.000000e+00> : vector<8xf32>
      %30 = vector.multi_reduction <add>, %29, %cst_19 [0] : vector<8x8xf32> to vector<8xf32>
      %31 = vector.shape_cast %30 : vector<8xf32> to vector<1x8xf32>
      %32 = arith.addf %28, %31 : vector<1x8xf32>
      %c0_20 = arith.constant 0 : index
      %c0_21 = arith.constant 0 : index
      %33 = vector.load %arg8[%c0_20, %c0_21] : memref<1x8xf32, #tpu.memory_space<vmem>>, vector<1x8xf32>
      tpu.vector_store %arg8[%c0_20, %c0_21], %32 {strides = array<i32>} : memref<1x8xf32, #tpu.memory_space<vmem>>, vector<1x8xf32>,
      %c0_22 = arith.constant 0 : index
      %c0_23 = arith.constant 0 : index
      %34 = vector.load %arg9[%c0_22, %c0_23] : memref<1x8xf32, #tpu.memory_space<vmem>>, vector<1x8xf32>
      %cst_24 = arith.constant dense<0.000000e+00> : vector<8xf32>
      %35 = vector.multi_reduction <add>, %13, %cst_24 [0] : vector<8x8xf32> to vector<8xf32>
      %36 = vector.shape_cast %35 : vector<8xf32> to vector<1x8xf32>
      %37 = arith.addf %34, %36 : vector<1x8xf32>
      %c0_25 = arith.constant 0 : index
      %c0_26 = arith.constant 0 : index
      %38 = vector.load %arg9[%c0_25, %c0_26] : memref<1x8xf32, #tpu.memory_space<vmem>>, vector<1x8xf32>
      tpu.vector_store %arg9[%c0_25, %c0_26], %37 {strides = array<i32>} : memref<1x8xf32, #tpu.memory_space<vmem>>, vector<1x8xf32>,
    } else {
    }
    %17 = arith.cmpi eq, %arg0, %arg1 : i32
    %18 = arith.extui %17 : i1 to i32
    %c0_i32_9 = arith.constant 0 : i32
    %19 = arith.cmpi ne, %18, %c0_i32_9 : i32
    scf.if %19 {
      %23 = tpu.iota {dimensions = array<i32: 0>} : vector<8x8xi32>
      %24 = tpu.iota {dimensions = array<i32: 1>} : vector<8x8xi32>
      %25 = arith.cmpi ne, %23, %24 : vector<8x8xi32>
      %26 = arith.extui %25 : vector<8x8xi1> to vector<8x8xi32>
      %27 = arith.sitofp %26 : vector<8x8xi32> to vector<8x8xf32>
      %28 = arith.mulf %6, %27 : vector<8x8xf32>
      %c0_12 = arith.constant 0 : index
      %c0_13 = arith.constant 0 : index
      %29 = vector.load %arg7[%c0_12, %c0_13] : memref<1x8xf32, #tpu.memory_space<vmem>>, vector<1x8xf32>
      %cst_14 = arith.constant dense<0.000000e+00> : vector<8xf32>
      %30 = vector.multi_reduction <add>, %28, %cst_14 [0] : vector<8x8xf32> to vector<8xf32>
      %31 = vector.shape_cast %30 : vector<8xf32> to vector<1x8xf32>
      %32 = arith.addf %29, %31 : vector<1x8xf32>
      %c0_15 = arith.constant 0 : index
      %c0_16 = arith.constant 0 : index
      %33 = vector.load %arg7[%c0_15, %c0_16] : memref<1x8xf32, #tpu.memory_space<vmem>>, vector<1x8xf32>
      tpu.vector_store %arg7[%c0_15, %c0_16], %32 {strides = array<i32>} : memref<1x8xf32, #tpu.memory_space<vmem>>, vector<1x8xf32>,
      %c0_17 = arith.constant 0 : index
      %c0_18 = arith.constant 0 : index
      %34 = vector.load %arg8[%c0_17, %c0_18] : memref<1x8xf32, #tpu.memory_space<vmem>>, vector<1x8xf32>
      %35 = arith.mulf %13, %28 : vector<8x8xf32>
      %cst_19 = arith.constant dense<0.000000e+00> : vector<8xf32>
      %36 = vector.multi_reduction <add>, %35, %cst_19 [0] : vector<8x8xf32> to vector<8xf32>
      %37 = vector.shape_cast %36 : vector<8xf32> to vector<1x8xf32>
      %38 = arith.addf %34, %37 : vector<1x8xf32>
      %c0_20 = arith.constant 0 : index
      %c0_21 = arith.constant 0 : index
      %39 = vector.load %arg8[%c0_20, %c0_21] : memref<1x8xf32, #tpu.memory_space<vmem>>, vector<1x8xf32>
      tpu.vector_store %arg8[%c0_20, %c0_21], %38 {strides = array<i32>} : memref<1x8xf32, #tpu.memory_space<vmem>>, vector<1x8xf32>,
      %c0_22 = arith.constant 0 : index
      %c0_23 = arith.constant 0 : index
      %40 = vector.load %arg9[%c0_22, %c0_23] : memref<1x8xf32, #tpu.memory_space<vmem>>, vector<1x8xf32>
      %41 = arith.mulf %13, %27 : vector<8x8xf32>
      %cst_24 = arith.constant dense<0.000000e+00> : vector<8xf32>
      %42 = vector.multi_reduction <add>, %41, %cst_24 [0] : vector<8x8xf32> to vector<8xf32>
      %43 = vector.shape_cast %42 : vector<8xf32> to vector<1x8xf32>
      %44 = arith.addf %40, %43 : vector<1x8xf32>
      %c0_25 = arith.constant 0 : index
      %c0_26 = arith.constant 0 : index
      %45 = vector.load %arg9[%c0_25, %c0_26] : memref<1x8xf32, #tpu.memory_space<vmem>>, vector<1x8xf32>
      tpu.vector_store %arg9[%c0_25, %c0_26], %44 {strides = array<i32>} : memref<1x8xf32, #tpu.memory_space<vmem>>, vector<1x8xf32>,
    } else {
    }
    %c0_i32_10 = arith.constant 0 : i32
    %20 = arith.cmpi eq, %arg1, %c0_i32_10 : i32
    %21 = arith.extui %20 : i1 to i32
    %c0_i32_11 = arith.constant 0 : i32
    %22 = arith.cmpi ne, %21, %c0_i32_11 : i32
    scf.if %22 {
      %c0_12 = arith.constant 0 : index
      %c0_13 = arith.constant 0 : index
      %23 = vector.load %arg7[%c0_12, %c0_13] : memref<1x8xf32, #tpu.memory_space<vmem>>, vector<1x8xf32>
      %cst_14 = arith.constant 0.000000e+00 : f32
      %24 = vector.broadcast %cst_14 : f32 to vector<1x8xf32>
      %25 = arith.subf %23, %24 : vector<1x8xf32>
      %c0_15 = arith.constant 0 : index
      %c0_16 = arith.constant 0 : index
      %26 = vector.load %arg9[%c0_15, %c0_16] : memref<1x8xf32, #tpu.memory_space<vmem>>, vector<1x8xf32>
      %cst_17 = arith.constant 0.000000e+00 : f32
      %27 = vector.broadcast %cst_17 : f32 to vector<1x8xf32>
      %28 = arith.cmpf one, %26, %27 : vector<1x8xf32>
      %cst_18 = arith.constant 1.000000e+00 : f32
      %29 = vector.broadcast %cst_18 : f32 to vector<1x8xf32>
      %30 = arith.select %28, %26, %29 : vector<1x8xi1>, vector<1x8xf32>
      %c0_19 = arith.constant 0 : index
      %c0_20 = arith.constant 0 : index
      %31 = vector.load %arg8[%c0_19, %c0_20] : memref<1x8xf32, #tpu.memory_space<vmem>>, vector<1x8xf32>
      %32 = arith.mulf %25, %30 : vector<1x8xf32>
      %33 = arith.divf %31, %32 : vector<1x8xf32>
      %c0_21 = arith.constant 0 : index
      %c0_22 = arith.constant 0 : index
      %34 = vector.load %arg6[%c0_21, %c0_22] : memref<1x8xf32, #tpu.memory_space<vmem>>, vector<1x8xf32>
      tpu.vector_store %arg6[%c0_21, %c0_22], %33 {strides = array<i32>} : memref<1x8xf32, #tpu.memory_space<vmem>>, vector<1x8xf32>,
    } else {
    }
    return
  }
  func.func @transform_0(%arg0: i32, %arg1: i32) -> (i32, i32) {
    %c0_i32 = arith.constant 0 : i32
    %c0_i32_0 = arith.constant 0 : i32
    return %arg0, %c0_i32 : i32, i32
  }
  func.func @transform_1(%arg0: i32, %arg1: i32) -> (i32, i32) {
    %c0_i32 = arith.constant 0 : i32
    %c0_i32_0 = arith.constant 0 : i32
    return %arg1, %c0_i32 : i32, i32
  }
  func.func @transform_2(%arg0: i32, %arg1: i32) -> (i32, i32) {
    %c0_i32 = arith.constant 0 : i32
    %c0_i32_0 = arith.constant 0 : i32
    return %c0_i32, %arg0 : i32, i32
  }
  func.func @transform_3(%arg0: i32, %arg1: i32) -> (i32, i32) {
    %c0_i32 = arith.constant 0 : i32
    %c0_i32_0 = arith.constant 0 : i32
    return %arg1, %c0_i32 : i32, i32
  }
  func.func @transform_4(%arg0: i32, %arg1: i32) -> (i32, i32) {
    %c0_i32 = arith.constant 0 : i32
    %c0_i32_0 = arith.constant 0 : i32
    return %c0_i32, %arg0 : i32, i32
  }
}

</mosaic_0001>

<bundles_post_ra>
// kernel: tpu_custom_call.1
= control target key start
LH: loop header
LB: loop body
LE: loop exit
PB: predicated region body
PF: predicated region fallthrough
CT: control target
= control target key end

     0   :  { %9 = vsyncpa [#allocation6], 0  ;;  %s771_s0 = inlined_call_operand.vmem [shape: f32[8,128], index: 0, kind: input, shape index: {}]   ;;  %s772_s1 = inlined_call_operand.hbm [shape: f32[8,128], index: 1, kind: input, shape index: {}]   ;;  %s773_s2 = inlined_call_operand.vmem [shape: s32[1,8], index: 2, kind: input, shape index: {}]   ;;  %s774_s3 = inlined_call_operand.vmem [shape: s32[8,1], index: 3, kind: input, shape index: {}]   ;;  %s775_s4 = inlined_call_operand.hbm [shape: f32[1,8], index: 4, kind: output, shape index: {}]  }
   0x1   :  { %10 = vsyncpa [#allocation7], 0  ;;  %s710_s15 = smov [#allocation5]  }
   0x2   :  { %s19_s16 = sshll.u32 %s710_s15, 4  ;;  %s20_s16 = int_to_ptr.vmem [resolvable:$true] %s19_s16 }
   0x3   :  { %s674_s17 = scalar_lea.vmem %s20_s16, 128  ;;  %p679_p1 = scmp.lt.s32.totalorder %s20_s16, %s20_s16 }
   0x4   :  { %p675_p0 = scmp.ne.s32.totalorder %s20_s16, %s674_s17  ;;  %p680_p2 = scmp.lt.s32.totalorder %s674_s17, %s674_s17 }
   0x6   :  { %p681_p3 = por %p680_p2, %p679_p1 }
   0x8   :  { %p682_p4 = pnand %p681_p3, %p675_p0 }
   0xa   :  { %685 = shalt.err (!%p682_p4)
}
   0xb   :  { %22 = dma.hbm_to_vmem [thread:$0]  %s772_s1, 128, %s20_s16, [#allocation6]  }
   0xc   :  { %706 = dma.done.wait [#allocation6], 128  }
   0xd   :  { %707 = vsyncadd [#allocation6], 4294967168  ;;  %v711_v0 = vmov 0.0   ;;  %vm712_vm0 = vmmov 0   ;;  %v713_v1 = vmov 0   ;;  %v38_v2 = vld [vmem:[%s771_s0] sm:$0xff]  ;;  %v541_v15 = vlaneseq }
   0xe   :  { %626 = vmatprep.subr.mxu0 %v711_v0  ;;  %628 = vmatprep.mubr.msk.f32.mxu0 %vm712_vm0, %v711_v0  ;;  %v39_v3 = vld [vmem:[#allocation5] sm:$0xff]  ;;  %v71_v5 = vand.u32 4294901760, %v38_v2  ;;  %vm34_vm1 = vcmask 57344   ;;  %v611_v18 = vld [vmem:[%s773_s2] ss:$0 sm:$0xff]  ;;  %vm550_vm4 = vcmask 64512  }
   0xf   :  { %631 = vmatprep.subr.mxu1 %v711_v0  ;;  %633 = vmatprep.mubr.msk.f32.mxu1 %vm712_vm0, %v711_v0  ;;  %v488_v4 = vld [vmem:[%s774_s3] sm:$0xff]  ;;  %v106_v6 = vand.u32 4294901760, %v39_v3  ;;  %35 = vst.msk [vmem:[#allocation2] sm:$0x1] %vm34_vm1, %v711_v0  ;;  %36 = vst.msk [vmem:[#allocation3] sm:$0x1] %vm34_vm1, %v711_v0 }
  0x10   :  { %661 = vset.pattern.permute.xlu0 %v713_v1  ;;  %627 = vmatpush3.xpose.msra.mxu0 %v71_v5  ;;  %v148_v8 = vsub.f32 %v38_v2, %v71_v5  ;;  %37 = vst.msk [vmem:[#allocation4] sm:$0x1] %vm34_vm1, %v711_v0  ;;  %v542_v16 = vshrl.u32 %v541_v15, 7  ;;  %v544_v17 = vand.u32 127, %v541_v15  ;;  %s714_s2 = smov [#allocation8]  }
  0x11   :  { %491 = vperm.xlu0 %661, %v488_v4   ;;  %v107_v7 = vsub.f32 %v39_v3, %v106_v6  ;;  %636 = vmatprep.subr.mxu0 %v711_v0  ;;  %s602_s3 = sshll.u32 %s714_s2, 4  ;;  %s603_s3 = int_to_ptr.vmem [resolvable:$true] %s602_s3 }
  0x12   :  { %v149_v10 = vand.u32 4294901760, %v148_v8  ;;  %vm545_vm2 = vcmp.ne.s32.totalorder %v542_v16, %v544_v17  ;;  %s686_s24 = scalar_lea.vmem %s603_s3, 16  ;;  %s690_s25 = scalar_lea.vmem %s603_s3, 32 }
  0x13   :  { %v108_v9 = vand.u32 4294901760, %v107_v7  ;;  %v613_v19 = vsel %vm545_vm2, 1.0, %v711_v0  ;;  %p687_p5 = scmp.ne.s32.totalorder %s603_s3, %s686_s24  ;;  %p691_p6 = scmp.lt.s32.totalorder %s603_s3, %s603_s3 }
  0x14   :  { %v150_v12 = vsub.f32 %v148_v8, %v149_v10  ;;  %p692_p7 = scmp.lt.s32.totalorder %s690_s25, %s686_s24 }
  0x15   :  { %v109_v11 = vsub.f32 %v107_v7, %v108_v9 }
  0x16   :  { %v151_v14 = vand.u32 4294901760, %v150_v12  ;;  %v561_v3 = vld [vmem:[#allocation3] sm:$0x1]  ;;  %p693_p8 = por %p692_p7, %p691_p6 }
  0x17   :  { %v110_v13 = vand.u32 4294901760, %v109_v11  ;;  %v572_v29 = vld [vmem:[#allocation4] sm:$0x1] }
  0x18   :  { %632 = vmatpush3.xpose.msra.mxu1 %v151_v14  ;;  %p694_p9 = pnand %p693_p8, %p687_p5 }
  0x19   :  { %629 = vmatmul.mubr.f32.vlgmr.msra.gmra.mxu0 %v110_v13  ;;  %641 = vmatprep.subr.mxu1 %v711_v0 }
  0x1a   :  { %637 = vmatpush3.xpose.msra.mxu0 %v148_v8  ;;  %638 = vmatprep.mubr.msk.f32.mxu0 %vm712_vm0, %v711_v0 }
  0x1b   :  { %646 = vmatprep.subr.mxu0 %v711_v0  ;;  %634 = vmatmul.mubr.f32.vlgmr.msra.gmra.mxu1 %v106_v6 }
  0x1c   :  { %642 = vmatpush3.xpose.msra.mxu1 %v71_v5  ;;  %643 = vmatprep.mubr.msk.f32.mxu1 %vm712_vm0, %v711_v0 }
  0x1d   :  { %639 = vmatmul.mubr.f32.vlgmr.msra.gmra.mxu0 %v107_v7  ;;  %651 = vmatprep.subr.mxu1 %v711_v0 }
  0x1e   :  { %647 = vmatpush3.xpose.msra.mxu0 %v149_v10  ;;  %648 = vmatprep.mubr.msk.f32.mxu0 %vm712_vm0, %v711_v0 }
  0x1f   :  { %644 = vmatmul.mubr.f32.vlgmr.msra.gmra.mxu1 %v108_v9 }
  0x20   :  { %652 = vmatpush3.xpose.msra.mxu1 %v71_v5  ;;  %653 = vmatprep.mubr.msk.f32.mxu1 %vm712_vm0, %v711_v0 }
  0x21   :  { %649 = vmatmul.mubr.f32.vlgmr.msra.gmra.mxu0 %v106_v6 }
  0x23   :  { %654 = vmatmul.mubr.f32.vlgmr.msra.gmra.mxu1 %v106_v6 }
  0x8c   :  { %v492_v20 = vpop.permute.xlu0 %491 }
  0x8d   :  { %vm497_vm3 = vcmp.eq.s32.totalorder %v492_v20, %v611_v18 }
  0x8e   :  { %v612_v21 = vsel %vm497_vm3, 1.0, %v711_v0  ;;  %v549_v0 = vld [vmem:[#allocation2] sm:$0x1] }
  0x8f   :  { %v573_v22 = vmul.f32 %v613_v19, %v612_v21 }
  0x91   :  { %v574_v23 = vsel %vm550_vm4, %v573_v22, 0.0 }
  0x92   :  { %v575_v24 = vrot.slane %v574_v23, 4 }
  0x94   :  { %v576_v25 = vadd.f32 %v575_v24, %v574_v23 }
  0x96   :  { %v577_v26 = vrot.slane %v576_v25, 2 }
  0x98   :  { %v578_v27 = vadd.f32 %v577_v26, %v576_v25 }
  0x9a   :  { %v579_v28 = vrot.slane %v578_v27, 1 }
  0x9c   :  { %v580_v30 = vadd.f32 %v579_v28, %v578_v27 }
  0x9e   :  { %v581_v31 = vadd.f32 %v580_v30, %v572_v29 }
  0xa0   :  { %582 = vst.msk [vmem:[#allocation4] sm:$0x1] %vm34_vm1, %v581_v31 }
  0xa7   :  { %v587_v7 = vld [vmem:[#allocation4] sm:$0x1] }
  0xa8   :  { %vm588_vm5 = vcmp.ne.f32.partialorder %v587_v7, 0.0 }
  0xa9   :  { %v589_v9 = vsel %vm588_vm5, %v587_v7, 1.0 }
  0xd9   :  { %v112_v32 = vpop.f32.mrf.mxu0 }
  0xdb   :  { %v630_v33 = vpop.f32.mrf.mxu0  ;;  %v188_v34 = vpop.f32.mrf.mxu1 }
  0xdc   :  { %v189_v35 = vadd.f32 %v188_v34, %v112_v32 }
  0xdd   :  { %v262_v36 = vpop.f32.mrf.mxu0  ;;  %v635_v37 = vpop.f32.mrf.mxu1 }
  0xde   :  { %v263_v38 = vadd.f32 %v262_v36, %v189_v35 }
  0xdf   :  { %v640_v39 = vpop.f32.mrf.mxu0  ;;  %v336_v40 = vpop.f32.mrf.mxu1 }
  0xe0   :  { %v337_v41 = vadd.f32 %v336_v40, %v263_v38 }
  0xe1   :  { %v410_v42 = vpop.f32.mrf.mxu0  ;;  %v645_v43 = vpop.f32.mrf.mxu1 }
  0xe2   :  { %v411_v44 = vadd.f32 %v410_v42, %v337_v41 }
  0xe3   :  { %v650_v45 = vpop.f32.mrf.mxu0  ;;  %v482_v46 = vpop.f32.mrf.mxu1 }
  0xe4   :  { %v483_v47 = vadd.f32 %v482_v46, %v411_v44 }
  0xe5   :  { %v655_v48 = vpop.f32.mrf.mxu1 }
  0xe6   :  { %v486_v49 = vmul.f32 1.442695, %v483_v47 }
  0xe8   :  { %662 = vpow2.f32 %v486_v49 }
  0xf5   :  { %v663_v50 = vpop.eup %662 }
  0xf6   :  { %v548_v51 = vmul.f32 %v663_v50, %v613_v19 }
  0xf8   :  { %v551_v52 = vsel %vm550_vm4, %v548_v51, 0.0  ;;  %v562_v53 = vmul.f32 %v612_v21, %v548_v51 }
  0xf9   :  { %v552_v54 = vrot.slane %v551_v52, 4 }
  0xfa   :  { %v563_v55 = vsel %vm550_vm4, %v562_v53, 0.0 }
  0xfb   :  { %v553_v56 = vadd.f32 %v552_v54, %v551_v52  ;;  %v564_v57 = vrot.slane %v563_v55, 4 }
  0xfd   :  { %v554_v58 = vrot.slane %v553_v56, 2  ;;  %v565_v59 = vadd.f32 %v564_v57, %v563_v55 }
  0xff   :  { %v555_v60 = vadd.f32 %v554_v58, %v553_v56  ;;  %v566_v61 = vrot.slane %v565_v59, 2 }
 0x101   :  { %v556_v62 = vrot.slane %v555_v60, 1  ;;  %v567_v63 = vadd.f32 %v566_v61, %v565_v59 }
 0x103   :  { %v557_v1 = vadd.f32 %v556_v62, %v555_v60  ;;  %v568_v2 = vrot.slane %v567_v63, 1 }
 0x105   :  { %v558_v4 = vadd.f32 %v557_v1, %v549_v0  ;;  %v569_v5 = vadd.f32 %v568_v2, %v567_v63 }
 0x107   :  { %560 = vst.msk [vmem:[#allocation2] sm:$0x1] %vm34_vm1, %v558_v4  ;;  %v570_v6 = vadd.f32 %v569_v5, %v561_v3 }
 0x109   :  { %571 = vst.msk [vmem:[#allocation3] sm:$0x1] %vm34_vm1, %v570_v6 }
 0x10e   :  { %v586_v8 = vld [vmem:[#allocation2] sm:$0x1] }
 0x10f   :  { %v591_v10 = vmul.f32 %v589_v9, %v586_v8 }
 0x110   :  { %v590_v12 = vld [vmem:[#allocation3] sm:$0x1] }
 0x111   :  { %664 = vrcp.f32 %v591_v10 }
 0x11e   :  { %v665_v11 = vpop.eup %664 }
 0x11f   :  { %v593_v13 = vmul.f32 %v665_v11, %v590_v12 }
 0x121   :  { %595 = vst.msk [vmem:[#allocation8] sm:$0x1] %vm34_vm1, %v593_v13 }
 0x122   :  { %697 = shalt.err (!%p694_p9)
}
 0x123   :  { %605 = dma.vmem_to_hbm [thread:$0]  %s603_s3, 16, %s775_s4, [#allocation7]  }
 0x124   :  { %708 = dma.done.wait [#allocation7], 16  }
 0x125   :  { %709 = vsyncadd [#allocation7], 4294967280 }
 0x126   :  { %609 = vsyncpa [#allocation6], 1 }
 0x127   :  { %610 = vsyncpa [#allocation7], 1 }

</bundles_post_ra>
